<compile_context>
chip_gen: v6e
topology: v6e:2x2x1
jax: 0.10.0
libtpu: 0.0.40
codegen_flags: <defaults>
</compile_context>

<pallas_src>
import jax
import jax.numpy as jnp
from jax.experimental import pallas as pl
from jax.experimental.pallas import tpu as pltpu

EPS = 1e-5
LANE = 128
SLAB_ROWS = 16  # 10 parameter vectors, padded up to a sublane multiple


def mlp_decoder_kernel(x_ref, w1_ref, w2_ref, w3_ref, w4_ref, vec_ref, o_ref):
    inv_n = 1.0 / x_ref.shape[0]          # static true batch size (no row padding)
    hid_p = w1_ref.shape[1]
    out_p = w3_ref.shape[1]
    bin_p = w4_ref.shape[1]

    def vec(row, width):
        # (1, width) f32 row from the packed parameter slab (static slice -> view).
        return vec_ref[row:row + 1, :width]

    def linear(h_bf16, w_ref, bias):
        # bf16 operands on the MXU, f32 accumulation, f32 bias add.
        return jnp.dot(h_bf16, w_ref[...], preferred_element_type=jnp.float32) + bias

    def bn_relu(h, g, beta):
        # ReLU then training-mode BatchNorm1d (batch mean, biased variance), all f32.
        # mu / E[h^2] reductions issue back-to-back; mean is folded into the shift so
        # besides the ReLU only h*h and h*scale+shift touch the full tensor.
        h = jnp.maximum(h, 0.0)
        mu = jnp.sum(h, axis=0, keepdims=True) * inv_n          # XLU reduce #1
        ex2 = jnp.sum(h * h, axis=0, keepdims=True) * inv_n     # XLU reduce #2
        var = jnp.maximum(ex2 - mu * mu, 0.0)                   # (1, D), cheap clamp
        scale = jax.lax.rsqrt(var + EPS) * g                    # (1, D) folded factor
        shift = beta - mu * scale                               # (1, D)
        return h * scale + shift

    h = bn_relu(linear(x_ref[...], w1_ref, vec(0, hid_p)), vec(1, hid_p), vec(2, hid_p))
    h = bn_relu(linear(h.astype(jnp.bfloat16), w2_ref, vec(3, hid_p)),
                vec(4, hid_p), vec(5, hid_p))
    h = bn_relu(linear(h.astype(jnp.bfloat16), w3_ref, vec(6, out_p)),
                vec(7, out_p), vec(8, out_p))
    o_ref[...] = linear(h.astype(jnp.bfloat16), w4_ref, vec(9, bin_p)).astype(o_ref.dtype)


def _round_up(n, m):
    return ((n + m - 1) // m) * m


def _pad2d(a, rows, cols):
    return jnp.pad(a, ((0, rows - a.shape[0]), (0, cols - a.shape[1])))


def mlp_decoder(x, params):
    """x: (N, in_dim) float32. params: dict of 2-D float32 arrays (weights as (in, out))."""
    N, in_dim = x.shape
    hidden_dim = params["w1"].shape[1]
    out_dim = params["w3"].shape[1]
    binary = params["w4"].shape[1]

    in_p = _round_up(in_dim, LANE)
    hid_p = _round_up(hidden_dim, LANE)
    out_p = _round_up(out_dim, LANE)
    bin_p = _round_up(binary, LANE)
    vec_p = max(hid_p, out_p, bin_p)

    f32, bf16 = jnp.float32, jnp.bfloat16

    # Lane-dense zero padding.  Padded gamma/beta/bias are 0 and the following layer's
    # padded weight rows are 0, so padded lanes stay exactly 0 through ReLU/BN.
    xp = _pad2d(x, N, in_p).astype(bf16)                   # bf16 once, in the wrapper
    w1 = _pad2d(params["w1"], in_p, hid_p).astype(bf16)
    w2 = _pad2d(params["w2"], hid_p, hid_p).astype(bf16)
    w3 = _pad2d(params["w3"], hid_p, out_p).astype(bf16)
    w4 = _pad2d(params["w4"], out_p, bin_p).astype(bf16)

    # Pack the ten (1, D) parameter vectors into a single f32 slab -> one DMA.
    def slab_row(v):
        v = v.reshape(-1).astype(f32)
        return jnp.pad(v, (0, vec_p - v.shape[0]))

    vec_slab = jnp.stack(
        [slab_row(params[k]) for k in
         ("b1", "g1", "be1", "b2", "g2", "be2", "b3", "g3", "be3", "b4")]
        + [jnp.zeros((vec_p,), f32)] * (SLAB_ROWS - 10))

    args = (xp, w1, w2, w3, w4, vec_slab)

    # Size scoped VMEM from the actual single-block footprint (double-buffered I/O plus
    # a few live f32 activation tensors), clamped so it stays sane on v7x's 64 MiB.
    in_bytes = sum(int(a.size) * a.dtype.itemsize for a in args)
    out_bytes = N * bin_p * 4
    act_bytes = 6 * N * max(in_p, hid_p, out_p, bin_p) * 4
    vmem_need = 2 * (in_bytes + out_bytes) + act_bytes + (2 << 20)
    vmem_limit = int(min(max(vmem_need, 8 << 20), 96 << 20))

    def full_spec(a):
        nd = a.ndim
        return pl.BlockSpec(a.shape, lambda nd=nd: (0,) * nd)

    out_padded = pl.pallas_call(
        mlp_decoder_kernel,
        out_shape=jax.ShapeDtypeStruct((N, bin_p), jnp.float32),
        in_specs=[full_spec(a) for a in args],
        out_specs=pl.BlockSpec((N, bin_p), lambda: (0, 0)),
        compiler_params=pltpu.CompilerParams(vmem_limit_bytes=vmem_limit),
    )(*args)

    return out_padded[:, :binary]


def init_params(key, in_dim, hidden_dim, out_dim, binary=1):
    """Deterministic synthetic parameters (shapes match the PyTorch module)."""
    ks = jax.random.split(key, 12)

    def lin(kw, kb, fan_in, fan_out):
        bound = 1.0 / jnp.sqrt(fan_in)
        w = jax.random.uniform(kw, (fan_in, fan_out), jnp.float32, -bound, bound)
        b = jax.random.uniform(kb, (1, fan_out), jnp.float32, -bound, bound)
        return w, b

    w1, b1 = lin(ks[0], ks[1], in_dim, hidden_dim)
    w2, b2 = lin(ks[2], ks[3], hidden_dim, hidden_dim)
    w3, b3 = lin(ks[4], ks[5], hidden_dim, out_dim)
    w4, b4 = lin(ks[6], ks[7], out_dim, binary)

    # BatchNorm affine params (perturbed from PyTorch defaults so the affine path is
    # exercised).
    g1 = 1.0 + 0.1 * jax.random.normal(ks[8], (1, hidden_dim), jnp.float32)
    be1 = 0.1 * jax.random.normal(ks[9], (1, hidden_dim), jnp.float32)
    g2 = 1.0 + 0.1 * jax.random.normal(ks[10], (1, hidden_dim), jnp.float32)
    be2 = 0.1 * jax.random.normal(ks[11], (1, hidden_dim), jnp.float32)
    k2 = jax.random.split(ks[11], 2)
    g3 = 1.0 + 0.1 * jax.random.normal(k2[0], (1, out_dim), jnp.float32)
    be3 = 0.1 * jax.random.normal(k2[1], (1, out_dim), jnp.float32)

    return dict(w1=w1, b1=b1, g1=g1, be1=be1,
                w2=w2, b2=b2, g2=g2, be2=be2,
                w3=w3, b3=b3, g3=g3, be3=be3,
                w4=w4, b4=b4)


def mlp_decoder_ref(x, p):
    """Pure-JAX reference mirroring the kernel numerics (bf16 matmul operands, f32
    accumulation, f32 BatchNorm with the same sum/sumsq + folded-shift formulation)."""
    n = x.shape[0]
    inv_n = 1.0 / n

    def lin(h, w, b):
        return jnp.dot(h.astype(jnp.bfloat16), w.astype(jnp.bfloat16),
                       preferred_element_type=jnp.float32) + b

    def bn_relu(h, g, b):
        h = jnp.maximum(h, 0.0)
        mu = jnp.sum(h, axis=0, keepdims=True) * inv_n
        ex2 = jnp.sum(h * h, axis=0, keepdims=True) * inv_n
        var = jnp.maximum(ex2 - mu * mu, 0.0)
        scale = jax.lax.rsqrt(var + EPS) * g
        return h * scale + (b - mu * scale)

    h = bn_relu(lin(x, p["w1"], p["b1"]), p["g1"], p["be1"])
    h = bn_relu(lin(h, p["w2"], p["b2"]), p["g2"], p["be2"])
    h = bn_relu(lin(h, p["w3"], p["b3"]), p["g3"], p["be3"])
    return lin(h, p["w4"], p["b4"])


if __name__ == "__main__":
    key = jax.random.PRNGKey(0)
    k_x, k_p = jax.random.split(key)

    N, in_dim, hidden_dim, out_dim, binary = 8, 32, 64, 32, 1
    x = jax.random.normal(k_x, (N, in_dim), jnp.float32)
    params = init_params(k_p, in_dim, hidden_dim, out_dim, binary)

    out = jax.block_until_ready(mlp_decoder(x, params))

    ref = mlp_decoder_ref(x, params)
    assert out.shape == (N, binary), out.shape
    assert jnp.allclose(out, ref, atol=5e-3, rtol=5e-3), "mismatch vs reference"

    print("KERNEL_OK")
</pallas_src>

<mosaic_0001>
module attributes {stable_mosaic.version = 11 : i64} {
  func.func @mlp_decoder_kernel(%arg0: memref<8x128xbf16, #tpu.memory_space<vmem>>, %arg1: memref<128x128xbf16, #tpu.memory_space<vmem>>, %arg2: memref<128x128xbf16, #tpu.memory_space<vmem>>, %arg3: memref<128x128xbf16, #tpu.memory_space<vmem>>, %arg4: memref<128x128xbf16, #tpu.memory_space<vmem>>, %arg5: memref<16x128xf32, #tpu.memory_space<vmem>>, %arg6: memref<8x128xf32, #tpu.memory_space<vmem>>) attributes {dimension_semantics = [], scalar_prefetch = 0 : i64, scratch_operands = 0 : i64, tpu.core_type = #tpu.core_type<tc>} {
    %c0 = arith.constant 0 : index
    %c0_0 = arith.constant 0 : index
    %0 = vector.load %arg0[%c0, %c0_0] : memref<8x128xbf16, #tpu.memory_space<vmem>>, vector<8x128xbf16>
    %c0_1 = arith.constant 0 : index
    %c0_2 = arith.constant 0 : index
    %1 = vector.load %arg5[%c0_1, %c0_2] : memref<16x128xf32, #tpu.memory_space<vmem>>, vector<1x128xf32>
    %c0_3 = arith.constant 0 : index
    %c0_4 = arith.constant 0 : index
    %2 = vector.load %arg1[%c0_3, %c0_4] : memref<128x128xbf16, #tpu.memory_space<vmem>>, vector<128x128xbf16>
    %cst = arith.constant dense<0.000000e+00> : vector<8x128xf32>
    %3 = tpu.matmul %0, %2, %cst {dimension_numbers = #tpu.dot_dimension_numbers<[1], [0], [0], [1], [0, 0, 1, 1], [], []>} : vector<8x128xbf16>, vector<128x128xbf16>, vector<8x128xf32> -> vector<8x128xf32>
    %4 = vector.broadcast %1 : vector<1x128xf32> to vector<8x128xf32>
    %5 = arith.addf %3, %4 : vector<8x128xf32>
    %c1 = arith.constant 1 : index
    %c0_5 = arith.constant 0 : index
    %6 = vector.load %arg5[%c1, %c0_5] : memref<16x128xf32, #tpu.memory_space<vmem>>, vector<1x128xf32>
    %c2 = arith.constant 2 : index
    %c0_6 = arith.constant 0 : index
    %7 = vector.load %arg5[%c2, %c0_6] : memref<16x128xf32, #tpu.memory_space<vmem>>, vector<1x128xf32>
    %cst_7 = arith.constant 0.000000e+00 : f32
    %8 = vector.broadcast %cst_7 : f32 to vector<8x128xf32>
    %9 = arith.maximumf %5, %8 : vector<8x128xf32>
    %cst_8 = arith.constant dense<0.000000e+00> : vector<128xf32>
    %10 = vector.multi_reduction <add>, %9, %cst_8 [0] : vector<8x128xf32> to vector<128xf32>
    %11 = vector.shape_cast %10 : vector<128xf32> to vector<1x128xf32>
    %cst_9 = arith.constant 1.250000e-01 : f32
    %12 = vector.broadcast %cst_9 : f32 to vector<1x128xf32>
    %13 = arith.mulf %11, %12 : vector<1x128xf32>
    %14 = arith.mulf %9, %9 : vector<8x128xf32>
    %cst_10 = arith.constant dense<0.000000e+00> : vector<128xf32>
    %15 = vector.multi_reduction <add>, %14, %cst_10 [0] : vector<8x128xf32> to vector<128xf32>
    %16 = vector.shape_cast %15 : vector<128xf32> to vector<1x128xf32>
    %cst_11 = arith.constant 1.250000e-01 : f32
    %17 = vector.broadcast %cst_11 : f32 to vector<1x128xf32>
    %18 = arith.mulf %16, %17 : vector<1x128xf32>
    %19 = arith.mulf %13, %13 : vector<1x128xf32>
    %20 = arith.subf %18, %19 : vector<1x128xf32>
    %cst_12 = arith.constant 0.000000e+00 : f32
    %21 = vector.broadcast %cst_12 : f32 to vector<1x128xf32>
    %22 = arith.maximumf %20, %21 : vector<1x128xf32>
    %cst_13 = arith.constant 9.99999974E-6 : f32
    %23 = vector.broadcast %cst_13 : f32 to vector<1x128xf32>
    %24 = arith.addf %22, %23 : vector<1x128xf32>
    %25 = math.rsqrt %24 : vector<1x128xf32>
    %26 = arith.mulf %25, %6 : vector<1x128xf32>
    %27 = arith.mulf %13, %26 : vector<1x128xf32>
    %28 = arith.subf %7, %27 : vector<1x128xf32>
    %29 = vector.broadcast %26 : vector<1x128xf32> to vector<8x128xf32>
    %30 = arith.mulf %9, %29 : vector<8x128xf32>
    %31 = vector.broadcast %28 : vector<1x128xf32> to vector<8x128xf32>
    %32 = arith.addf %30, %31 : vector<8x128xf32>
    %33 = arith.truncf %32 : vector<8x128xf32> to vector<8x128xbf16>
    %c3 = arith.constant 3 : index
    %c0_14 = arith.constant 0 : index
    %34 = vector.load %arg5[%c3, %c0_14] : memref<16x128xf32, #tpu.memory_space<vmem>>, vector<1x128xf32>
    %c0_15 = arith.constant 0 : index
    %c0_16 = arith.constant 0 : index
    %35 = vector.load %arg2[%c0_15, %c0_16] : memref<128x128xbf16, #tpu.memory_space<vmem>>, vector<128x128xbf16>
    %cst_17 = arith.constant dense<0.000000e+00> : vector<8x128xf32>
    %36 = tpu.matmul %33, %35, %cst_17 {dimension_numbers = #tpu.dot_dimension_numbers<[1], [0], [0], [1], [0, 0, 1, 1], [], []>} : vector<8x128xbf16>, vector<128x128xbf16>, vector<8x128xf32> -> vector<8x128xf32>
    %37 = vector.broadcast %34 : vector<1x128xf32> to vector<8x128xf32>
    %38 = arith.addf %36, %37 : vector<8x128xf32>
    %c4 = arith.constant 4 : index
    %c0_18 = arith.constant 0 : index
    %39 = vector.load %arg5[%c4, %c0_18] : memref<16x128xf32, #tpu.memory_space<vmem>>, vector<1x128xf32>
    %c5 = arith.constant 5 : index
    %c0_19 = arith.constant 0 : index
    %40 = vector.load %arg5[%c5, %c0_19] : memref<16x128xf32, #tpu.memory_space<vmem>>, vector<1x128xf32>
    %cst_20 = arith.constant 0.000000e+00 : f32
    %41 = vector.broadcast %cst_20 : f32 to vector<8x128xf32>
    %42 = arith.maximumf %38, %41 : vector<8x128xf32>
    %cst_21 = arith.constant dense<0.000000e+00> : vector<128xf32>
    %43 = vector.multi_reduction <add>, %42, %cst_21 [0] : vector<8x128xf32> to vector<128xf32>
    %44 = vector.shape_cast %43 : vector<128xf32> to vector<1x128xf32>
    %cst_22 = arith.constant 1.250000e-01 : f32
    %45 = vector.broadcast %cst_22 : f32 to vector<1x128xf32>
    %46 = arith.mulf %44, %45 : vector<1x128xf32>
    %47 = arith.mulf %42, %42 : vector<8x128xf32>
    %cst_23 = arith.constant dense<0.000000e+00> : vector<128xf32>
    %48 = vector.multi_reduction <add>, %47, %cst_23 [0] : vector<8x128xf32> to vector<128xf32>
    %49 = vector.shape_cast %48 : vector<128xf32> to vector<1x128xf32>
    %cst_24 = arith.constant 1.250000e-01 : f32
    %50 = vector.broadcast %cst_24 : f32 to vector<1x128xf32>
    %51 = arith.mulf %49, %50 : vector<1x128xf32>
    %52 = arith.mulf %46, %46 : vector<1x128xf32>
    %53 = arith.subf %51, %52 : vector<1x128xf32>
    %cst_25 = arith.constant 0.000000e+00 : f32
    %54 = vector.broadcast %cst_25 : f32 to vector<1x128xf32>
    %55 = arith.maximumf %53, %54 : vector<1x128xf32>
    %cst_26 = arith.constant 9.99999974E-6 : f32
    %56 = vector.broadcast %cst_26 : f32 to vector<1x128xf32>
    %57 = arith.addf %55, %56 : vector<1x128xf32>
    %58 = math.rsqrt %57 : vector<1x128xf32>
    %59 = arith.mulf %58, %39 : vector<1x128xf32>
    %60 = arith.mulf %46, %59 : vector<1x128xf32>
    %61 = arith.subf %40, %60 : vector<1x128xf32>
    %62 = vector.broadcast %59 : vector<1x128xf32> to vector<8x128xf32>
    %63 = arith.mulf %42, %62 : vector<8x128xf32>
    %64 = vector.broadcast %61 : vector<1x128xf32> to vector<8x128xf32>
    %65 = arith.addf %63, %64 : vector<8x128xf32>
    %66 = arith.truncf %65 : vector<8x128xf32> to vector<8x128xbf16>
    %c6 = arith.constant 6 : index
    %c0_27 = arith.constant 0 : index
    %67 = vector.load %arg5[%c6, %c0_27] : memref<16x128xf32, #tpu.memory_space<vmem>>, vector<1x128xf32>
    %c0_28 = arith.constant 0 : index
    %c0_29 = arith.constant 0 : index
    %68 = vector.load %arg3[%c0_28, %c0_29] : memref<128x128xbf16, #tpu.memory_space<vmem>>, vector<128x128xbf16>
    %cst_30 = arith.constant dense<0.000000e+00> : vector<8x128xf32>
    %69 = tpu.matmul %66, %68, %cst_30 {dimension_numbers = #tpu.dot_dimension_numbers<[1], [0], [0], [1], [0, 0, 1, 1], [], []>} : vector<8x128xbf16>, vector<128x128xbf16>, vector<8x128xf32> -> vector<8x128xf32>
    %70 = vector.broadcast %67 : vector<1x128xf32> to vector<8x128xf32>
    %71 = arith.addf %69, %70 : vector<8x128xf32>
    %c7 = arith.constant 7 : index
    %c0_31 = arith.constant 0 : index
    %72 = vector.load %arg5[%c7, %c0_31] : memref<16x128xf32, #tpu.memory_space<vmem>>, vector<1x128xf32>
    %c8 = arith.constant 8 : index
    %c0_32 = arith.constant 0 : index
    %73 = vector.load %arg5[%c8, %c0_32] : memref<16x128xf32, #tpu.memory_space<vmem>>, vector<1x128xf32>
    %cst_33 = arith.constant 0.000000e+00 : f32
    %74 = vector.broadcast %cst_33 : f32 to vector<8x128xf32>
    %75 = arith.maximumf %71, %74 : vector<8x128xf32>
    %cst_34 = arith.constant dense<0.000000e+00> : vector<128xf32>
    %76 = vector.multi_reduction <add>, %75, %cst_34 [0] : vector<8x128xf32> to vector<128xf32>
    %77 = vector.shape_cast %76 : vector<128xf32> to vector<1x128xf32>
    %cst_35 = arith.constant 1.250000e-01 : f32
    %78 = vector.broadcast %cst_35 : f32 to vector<1x128xf32>
    %79 = arith.mulf %77, %78 : vector<1x128xf32>
    %80 = arith.mulf %75, %75 : vector<8x128xf32>
    %cst_36 = arith.constant dense<0.000000e+00> : vector<128xf32>
    %81 = vector.multi_reduction <add>, %80, %cst_36 [0] : vector<8x128xf32> to vector<128xf32>
    %82 = vector.shape_cast %81 : vector<128xf32> to vector<1x128xf32>
    %cst_37 = arith.constant 1.250000e-01 : f32
    %83 = vector.broadcast %cst_37 : f32 to vector<1x128xf32>
    %84 = arith.mulf %82, %83 : vector<1x128xf32>
    %85 = arith.mulf %79, %79 : vector<1x128xf32>
    %86 = arith.subf %84, %85 : vector<1x128xf32>
    %cst_38 = arith.constant 0.000000e+00 : f32
    %87 = vector.broadcast %cst_38 : f32 to vector<1x128xf32>
    %88 = arith.maximumf %86, %87 : vector<1x128xf32>
    %cst_39 = arith.constant 9.99999974E-6 : f32
    %89 = vector.broadcast %cst_39 : f32 to vector<1x128xf32>
    %90 = arith.addf %88, %89 : vector<1x128xf32>
    %91 = math.rsqrt %90 : vector<1x128xf32>
    %92 = arith.mulf %91, %72 : vector<1x128xf32>
    %93 = arith.mulf %79, %92 : vector<1x128xf32>
    %94 = arith.subf %73, %93 : vector<1x128xf32>
    %95 = vector.broadcast %92 : vector<1x128xf32> to vector<8x128xf32>
    %96 = arith.mulf %75, %95 : vector<8x128xf32>
    %97 = vector.broadcast %94 : vector<1x128xf32> to vector<8x128xf32>
    %98 = arith.addf %96, %97 : vector<8x128xf32>
    %99 = arith.truncf %98 : vector<8x128xf32> to vector<8x128xbf16>
    %c9 = arith.constant 9 : index
    %c0_40 = arith.constant 0 : index
    %100 = vector.load %arg5[%c9, %c0_40] : memref<16x128xf32, #tpu.memory_space<vmem>>, vector<1x128xf32>
    %c0_41 = arith.constant 0 : index
    %c0_42 = arith.constant 0 : index
    %101 = vector.load %arg4[%c0_41, %c0_42] : memref<128x128xbf16, #tpu.memory_space<vmem>>, vector<128x128xbf16>
    %cst_43 = arith.constant dense<0.000000e+00> : vector<8x128xf32>
    %102 = tpu.matmul %99, %101, %cst_43 {dimension_numbers = #tpu.dot_dimension_numbers<[1], [0], [0], [1], [0, 0, 1, 1], [], []>} : vector<8x128xbf16>, vector<128x128xbf16>, vector<8x128xf32> -> vector<8x128xf32>
    %103 = vector.broadcast %100 : vector<1x128xf32> to vector<8x128xf32>
    %104 = arith.addf %102, %103 : vector<8x128xf32>
    %c0_44 = arith.constant 0 : index
    %c0_45 = arith.constant 0 : index
    %105 = vector.load %arg6[%c0_44, %c0_45] : memref<8x128xf32, #tpu.memory_space<vmem>>, vector<8x128xf32>
    tpu.vector_store %arg6[%c0_44, %c0_45], %104 {strides = array<i32>} : memref<8x128xf32, #tpu.memory_space<vmem>>, vector<8x128xf32>,
    return
  }
}

</mosaic_0001>

<bundles_post_ra>
// kernel: tpu_custom_call.1
= control target key start
LH: loop header
LB: loop body
LE: loop exit
PB: predicated region body
PF: predicated region fallthrough
CT: control target
= control target key end

     0   :  { %11 = vsyncpa [#allocation3], 0  ;;  %s1154_s0 = inlined_call_operand.hbm [shape: bf16[8,128], index: 0, kind: input, shape index: {}]   ;;  %s1155_s1 = inlined_call_operand.hbm [shape: bf16[128,128], index: 1, kind: input, shape index: {}]   ;;  %s1156_s2 = inlined_call_operand.hbm [shape: bf16[128,128], index: 2, kind: input, shape index: {}]   ;;  %s1157_s3 = inlined_call_operand.hbm [shape: bf16[128,128], index: 3, kind: input, shape index: {}]   ;;  %s1158_s4 = inlined_call_operand.hbm [shape: bf16[128,128], index: 4, kind: input, shape index: {}]   ;;  %s1159_s5 = inlined_call_operand.hbm [shape: f32[16,128], index: 5, kind: input, shape index: {}]   ;;  %s1160_s6 = inlined_call_operand.hbm [shape: f32[8,128], index: 6, kind: output, shape index: {}]  }
   0x1   :  { %12 = vsyncpa [#allocation6], 0 }
   0x2   :  { %13 = vsyncpa [#allocation9], 0 }
   0x3   :  { %14 = vsyncpa [#allocation12], 0 }
   0x4   :  { %15 = vsyncpa [#allocation4], 0  ;;  %s1025_s21 = smov [#allocation5]  }
   0x5   :  { %s31_s22 = sshll.u32 %s1025_s21, 4  ;;  %s32_s22 = int_to_ptr.vmem [resolvable:$true] %s31_s22 }
   0x6   :  { %s883_s23 = scalar_lea.vmem %s32_s22, 1024  ;;  %p888_p1 = scmp.lt.s32.totalorder %s32_s22, %s32_s22 }
   0x7   :  { %p884_p0 = scmp.ne.s32.totalorder %s32_s22, %s883_s23  ;;  %p889_p2 = scmp.lt.s32.totalorder %s883_s23, %s883_s23 }
   0x9   :  { %p890_p3 = por %p889_p2, %p888_p1 }
   0xb   :  { %p891_p4 = pnand %p890_p3, %p884_p0 }
   0xd   :  { %894 = shalt.err (!%p891_p4)
}
   0xe   :  { %s1026_s24 = smov 64   ;;  %s1027_s25 = smov 4  }
   0xf   :  { %37 = dma.hbm_to_vmem [thread:$0]  %s1155_s1, 1024, %s32_s22, [#allocation6], %s1026_s24, %s1026_s24, %s1027_s25  }
  0x10   :  { %s1028_s28 = smov [#allocation8]   ;;  %s1029_s30 = smov [#allocation2]  }
  0x11   :  { %s55_s29 = sshll.u32 %s1028_s28, 4  ;;  %s22_s7 = sshll.u32 %s1029_s30, 4  ;;  %s56_s29 = int_to_ptr.vmem [resolvable:$true] %s55_s29  ;;  %s23_s7 = int_to_ptr.vmem [resolvable:$true] %s22_s7 }
  0x12   :  { %s903_s8 = scalar_lea.vmem %s56_s29, 1024  ;;  %p908_p6 = scmp.lt.s32.totalorder %s56_s29, %s56_s29 }
  0x13   :  { %p904_p5 = scmp.ne.s32.totalorder %s56_s29, %s903_s8  ;;  %p909_p7 = scmp.lt.s32.totalorder %s903_s8, %s903_s8 }
  0x15   :  { %p910_p8 = por %p909_p7, %p908_p6 }
  0x17   :  { %p911_p9 = pnand %p910_p8, %p904_p5 }
  0x19   :  { %914 = shalt.err (!%p911_p9)
}
  0x1a   :  { %61 = dma.hbm_to_vmem [thread:$0]  %s1157_s3, 1024, %s56_s29, [#allocation9], %s1026_s24, %s1026_s24, %s1027_s25  }
  0x1b   :  { %s923_s1 = scalar_lea.vmem %s23_s7, 64  ;;  %p928_p11 = scmp.lt.s32.totalorder %s23_s7, %s23_s7 }
  0x1c   :  { %p924_p10 = scmp.ne.s32.totalorder %s23_s7, %s923_s1  ;;  %p929_p12 = scmp.lt.s32.totalorder %s923_s1, %s923_s1 }
  0x1e   :  { %p930_p13 = por %p929_p12, %p928_p11 }
  0x20   :  { %p931_p0 = pnand %p930_p13, %p924_p10 }
  0x22   :  { %934 = shalt.err (!%p931_p0)
}
  0x23   :  { %25 = dma.hbm_to_vmem [thread:$0]  %s1154_s0, 64, %s23_s7, [#allocation3]  }
  0x24   :  { %s1030_s13 = smov [#allocation7]   ;;  %s1031_s15 = smov [#allocation10]  }
  0x25   :  { %s43_s14 = sshll.u32 %s1030_s13, 4  ;;  %s67_s16 = sshll.u32 %s1031_s15, 4  ;;  %s44_s14 = int_to_ptr.vmem [resolvable:$true] %s43_s14  ;;  %s68_s16 = int_to_ptr.vmem [resolvable:$true] %s67_s16 }
  0x26   :  { %s943_s17 = scalar_lea.vmem %s44_s14, 1024  ;;  %p948_p2 = scmp.lt.s32.totalorder %s44_s14, %s44_s14 }
  0x27   :  { %p944_p1 = scmp.ne.s32.totalorder %s44_s14, %s943_s17  ;;  %p949_p3 = scmp.lt.s32.totalorder %s943_s17, %s943_s17 }
  0x29   :  { %p950_p4 = por %p949_p3, %p948_p2 }
  0x2b   :  { %p951_p5 = pnand %p950_p4, %p944_p1 }
  0x2d   :  { %954 = shalt.err (!%p951_p5)
}
  0x2e   :  { %49 = dma.hbm_to_vmem [thread:$0]  %s1156_s2, 1024, %s44_s14, [#allocation6], %s1026_s24, %s1026_s24, %s1027_s25  }
  0x2f   :  { %s963_s0 = scalar_lea.vmem %s68_s16, 1024  ;;  %p968_p7 = scmp.lt.s32.totalorder %s68_s16, %s68_s16 }
  0x30   :  { %p964_p6 = scmp.ne.s32.totalorder %s68_s16, %s963_s0  ;;  %p969_p8 = scmp.lt.s32.totalorder %s963_s0, %s963_s0 }
  0x32   :  { %p970_p9 = por %p969_p8, %p968_p7 }
  0x34   :  { %p971_p10 = pnand %p970_p9, %p964_p6 }
  0x36   :  { %974 = shalt.err (!%p971_p10)
}
  0x37   :  { %73 = dma.hbm_to_vmem [thread:$0]  %s1158_s4, 1024, %s68_s16, [#allocation9], %s1026_s24, %s1026_s24, %s1027_s25  }
  0x38   :  { %s1032_s21 = smov [#allocation11]  }
  0x39   :  { %s79_s22 = sshll.u32 %s1032_s21, 4  ;;  %s80_s22 = int_to_ptr.vmem [resolvable:$true] %s79_s22 }
  0x3a   :  { %s983_s23 = scalar_lea.vmem %s80_s22, 256  ;;  %p988_p12 = scmp.lt.s32.totalorder %s80_s22, %s80_s22 }
  0x3b   :  { %p984_p11 = scmp.ne.s32.totalorder %s80_s22, %s983_s23  ;;  %p989_p13 = scmp.lt.s32.totalorder %s983_s23, %s983_s23 }
  0x3d   :  { %p990_p0 = por %p989_p13, %p988_p12 }
  0x3f   :  { %p991_p1 = pnand %p990_p0, %p984_p11 }
  0x41   :  { %994 = shalt.err (!%p991_p1)
}
  0x42   :  { %s1033_s2 = smov 128   ;;  %s1034_s26 = smov 8  }
  0x43   :  { %85 = dma.hbm_to_vmem [thread:$0]  %s1159_s5, 256, %s80_s22, [#allocation12], %s1033_s2, %s1033_s2, %s1034_s26  }
  0x44   :  { %1015 = dma.done.wait [#allocation3], 64  }
  0x45   :  { %1016 = vsyncadd [#allocation3], 4294967232 }
  0x46   :  { %1017 = dma.done.wait [#allocation6], 2048  }
  0x47   :  { %1018 = vsyncadd [#allocation6], 4294965248 }
  0x48   :  { %1019 = dma.done.wait [#allocation9], 2048  }
  0x49   :  { %1020 = vsyncadd [#allocation9], 4294965248 }
  0x4a   :  { %1021 = dma.done.wait [#allocation12], 256  }
  0x4b   :  { %1022 = vsyncadd [#allocation12], 4294967040  ;;  %v1035_v0 = vmov 0.0   ;;  %vm1036_vm0 = vmmov 0   ;;  %v837_v1 = vld [vmem:[#allocation5 + $0x38] sm:$0xff]   ;;  %v838_v2 = vld [vmem:[#allocation5 + $0x30] sm:$0xff]   ;;  %v241_v44 = vlaneseq }
  0x4c   :  { %744 = vmatprep.subr.bf16.mxu0 %v1035_v0  ;;  %760 = vmatprep.mubr.msk.bf16.mxu0 %vm1036_vm0, %v1035_v0  ;;  %v839_v3 = vld [vmem:[#allocation5 + $0x28] sm:$0xff]   ;;  %v840_v4 = vld [vmem:[#allocation5 + $0x20] sm:$0xff]   ;;  %v841_v5 = vld [vmem:[#allocation5 + $0x18] sm:$0xff]   ;;  %s1037_s4 = smov [#allocation13]  }
  0x4d   :  { %764 = vmatprep.subr.bf16.mxu1 %v1035_v0  ;;  %780 = vmatprep.mubr.msk.bf16.mxu1 %vm1036_vm0, %v1035_v0  ;;  %v842_v6 = vld [vmem:[#allocation5 + $0x10] sm:$0xff]   ;;  %v843_v7 = vld [vmem:[#allocation5 + $0x8] sm:$0xff]   ;;  %v844_v8 = vld [vmem:[#allocation5] sm:$0xff]   ;;  %v242_v45 = vshrl.u32 %v241_v44, 7  ;;  %s660_s5 = sshll.u32 %s1037_s4, 4  ;;  %s661_s5 = int_to_ptr.vmem [resolvable:$true] %s660_s5 }
  0x4e   :  { %745 = vmatpush3.bf16.msra.mxu0 %v837_v1  ;;  %v105_v9 = vld [vmem:[#allocation2] sm:$0xf]  ;;  %v846_v11 = vld [vmem:[#allocation7 + $0x30] sm:$0xff]   ;;  %v847_v12 = vld [vmem:[#allocation7 + $0x28] sm:$0xff]   ;;  %s995_s24 = scalar_lea.vmem %s661_s5, 128  ;;  %p1000_p3 = scmp.lt.s32.totalorder %s661_s5, %s661_s5 }
  0x4f   :  { %746 = vmatprep.subr.bf16.mxu0 %v1035_v0  ;;  %v845_v10 = vld [vmem:[#allocation7 + $0x38] sm:$0xff]   ;;  %v848_v13 = vld [vmem:[#allocation7 + $0x20] sm:$0xff]   ;;  %v850_v15 = vld [vmem:[#allocation7 + $0x10] sm:$0xff]   ;;  %v1127_v47 = vsub.s32 0, %v242_v45  ;;  %p996_p2 = scmp.ne.s32.totalorder %s661_s5, %s995_s24  ;;  %p1001_p4 = scmp.lt.s32.totalorder %s995_s24, %s995_s24 }
  0x50   :  { %765 = vmatpush3.bf16.msra.mxu1 %v845_v10  ;;  %v849_v14 = vld [vmem:[#allocation7 + $0x18] sm:$0xff]   ;;  %v851_v16 = vld [vmem:[#allocation7 + $0x8] sm:$0xff]   ;;  %v852_v17 = vld [vmem:[#allocation7] sm:$0xff]  }
  0x51   :  { %766 = vmatprep.subr.bf16.mxu1 %v1035_v0  ;;  %v672_v18 = vld [vmem:[#allocation11] ss:$0 sm:$0xff]  ;;  %v215_v46 = vld [vmem:[#allocation11 + $0x1] sm:$0x1]  ;;  %v216_v50 = vld [vmem:[#allocation11 + $0x2] sm:$0x1]  ;;  %p1002_p5 = por %p1001_p4, %p1000_p3 }
  0x52   :  { %747 = vmatpush3.bf16.msra.mxu0 %v838_v2  ;;  %v853_v58 = vld [vmem:[#allocation8 + $0x38] sm:$0xff]   ;;  %v854_v59 = vld [vmem:[#allocation8 + $0x30] sm:$0xff]   ;;  %v855_v60 = vld [vmem:[#allocation8 + $0x28] sm:$0xff]  }
  0x53   :  { %748 = vmatprep.subr.bf16.mxu0 %v1035_v0  ;;  %v856_v61 = vld [vmem:[#allocation8 + $0x20] sm:$0xff]   ;;  %v857_v62 = vld [vmem:[#allocation8 + $0x18] sm:$0xff]   ;;  %v858_v63 = vld [vmem:[#allocation8 + $0x10] sm:$0xff]   ;;  %p1003_p6 = pnand %p1002_p5, %p996_p2 }
  0x54   :  { %767 = vmatpush3.bf16.msra.mxu1 %v846_v11  ;;  %v859_v1 = vld [vmem:[#allocation8 + $0x8] sm:$0xff]   ;;  %v860_v2 = vld [vmem:[#allocation8] sm:$0xff]   ;;  %v865_v44 = vld [vmem:[#allocation10 + $0x18] sm:$0xff]  }
  0x55   :  { %768 = vmatprep.subr.bf16.mxu1 %v1035_v0  ;;  %v866_v45 = vld [vmem:[#allocation10 + $0x10] sm:$0xff]  }
  0x56   :  { %749 = vmatpush3.bf16.msra.mxu0 %v839_v3  ;;  %v681_v3 = vld [vmem:[#allocation11 + $0x3] ss:$0 sm:$0xff] }
  0x57   :  { %750 = vmatprep.subr.bf16.mxu0 %v1035_v0 }
  0x58   :  { %769 = vmatpush3.bf16.msra.mxu1 %v847_v12 }
  0x59   :  { %770 = vmatprep.subr.bf16.mxu1 %v1035_v0 }
  0x5a   :  { %751 = vmatpush3.bf16.msra.mxu0 %v840_v4 }
  0x5b   :  { %752 = vmatprep.subr.bf16.mxu0 %v1035_v0 }
  0x5c   :  { %771 = vmatpush3.bf16.msra.mxu1 %v848_v13 }
  0x5d   :  { %772 = vmatprep.subr.bf16.mxu1 %v1035_v0 }
  0x5e   :  { %753 = vmatpush3.bf16.msra.mxu0 %v841_v5 }
  0x5f   :  { %754 = vmatprep.subr.bf16.mxu0 %v1035_v0 }
  0x60   :  { %773 = vmatpush3.bf16.msra.mxu1 %v849_v14 }
  0x61   :  { %774 = vmatprep.subr.bf16.mxu1 %v1035_v0 }
  0x62   :  { %755 = vmatpush3.bf16.msra.mxu0 %v842_v6 }
  0x63   :  { %756 = vmatprep.subr.bf16.mxu0 %v1035_v0 }
  0x64   :  { %775 = vmatpush3.bf16.msra.mxu1 %v850_v15 }
  0x65   :  { %776 = vmatprep.subr.bf16.mxu1 %v1035_v0 }
  0x66   :  { %757 = vmatpush3.bf16.msra.mxu0 %v843_v7 }
  0x67   :  { %758 = vmatprep.subr.bf16.mxu0 %v1035_v0 }
  0x68   :  { %777 = vmatpush3.bf16.msra.mxu1 %v851_v16 }
  0x69   :  { %778 = vmatprep.subr.bf16.mxu1 %v1035_v0 }
  0x6a   :  { %759 = vmatpush3.bf16.msra.mxu0 %v844_v8 }
  0x6b   :  { %784 = vmatprep.subr.bf16.mxu0 %v1035_v0 }
  0x6c   :  { %779 = vmatpush3.bf16.msra.mxu1 %v852_v17 }
  0x6d   :  { %761 = vmatmul.mubr.bf16.vlgmr.msra.gmra.mxu0 %v105_v9  ;;  %804 = vmatprep.subr.bf16.mxu1 %v1035_v0 }
  0x6e   :  { %800 = vmatprep.mubr.msk.bf16.mxu0 %vm1036_vm0, %v1035_v0  ;;  %785 = vmatpush3.bf16.msra.mxu0 %v853_v58 }
  0x6f   :  { %786 = vmatprep.subr.bf16.mxu0 %v1035_v0 }
  0x72   :  { %787 = vmatpush3.bf16.msra.mxu0 %v854_v59 }
  0x73   :  { %788 = vmatprep.subr.bf16.mxu0 %v1035_v0 }
  0x76   :  { %789 = vmatpush3.bf16.msra.mxu0 %v855_v60 }
  0x77   :  { %790 = vmatprep.subr.bf16.mxu0 %v1035_v0 }
  0x7a   :  { %791 = vmatpush3.bf16.msra.mxu0 %v856_v61 }
  0x7b   :  { %792 = vmatprep.subr.bf16.mxu0 %v1035_v0 }
  0x7e   :  { %793 = vmatpush3.bf16.msra.mxu0 %v857_v62 }
  0x7f   :  { %794 = vmatprep.subr.bf16.mxu0 %v1035_v0 }
  0x82   :  { %795 = vmatpush3.bf16.msra.mxu0 %v858_v63 }
  0x83   :  { %796 = vmatprep.subr.bf16.mxu0 %v1035_v0 }
  0x86   :  { %797 = vmatpush3.bf16.msra.mxu0 %v859_v1 }
  0x87   :  { %798 = vmatprep.subr.bf16.mxu0 %v1035_v0 }
  0x8a   :  { %799 = vmatpush3.bf16.msra.mxu0 %v860_v2 }
 0x12d   :  { %v209_v19 = vpop.f32.mrf.mxu0 }
 0x12e   :  { %v210_v20 = vadd.f32 %v672_v18, %v209_v19 }
 0x12f   :  { %v762_v21 = vpop.f32.mrf.mxu0 }
 0x130   :  { %v217_v22 = vmax.f32 %v210_v20, 0.0 }
 0x131   :  { %v212_v23 = vpop.f32.mrf.mxu0 }
 0x132   :  { %v218_v24 = vrot.slane %v217_v22, 4  ;;  %v225_v25 = vmul.f32 %v217_v22, %v217_v22 }
 0x133   :  { %v763_v26 = vpop.f32.mrf.mxu0 }
 0x134   :  { %v219_v27 = vadd.f32 %v218_v24, %v217_v22  ;;  %v226_v28 = vrot.slane %v225_v25, 4 }
 0x136   :  { %v220_v29 = vrot.slane %v219_v27, 2  ;;  %v227_v30 = vadd.f32 %v226_v28, %v225_v25 }
 0x138   :  { %v221_v31 = vadd.f32 %v220_v29, %v219_v27  ;;  %v228_v32 = vrot.slane %v227_v30, 2  ;;  %v361_v29 = vld [vmem:[#allocation11 + $0x4] sm:$0x1] }
 0x13a   :  { %v222_v33 = vrot.slane %v221_v31, 1  ;;  %v229_v34 = vadd.f32 %v228_v32, %v227_v30  ;;  %v362_v32 = vld [vmem:[#allocation11 + $0x5] sm:$0x1] }
 0x13c   :  { %v230_v35 = vrot.slane %v229_v34, 1  ;;  %v223_v36 = vadd.f32 %v222_v33, %v221_v31 }
 0x13e   :  { %v231_v37 = vadd.f32 %v230_v35, %v229_v34  ;;  %v224_v38 = vmul.f32 0.125, %v223_v36 }
 0x140   :  { %v232_v39 = vmul.f32 0.125, %v231_v37  ;;  %v233_v40 = vmul.f32 %v224_v38, %v224_v38 }
 0x142   :  { %v234_v41 = vsub.f32 %v232_v39, %v233_v40  ;;  %v861_v40 = vld [vmem:[#allocation10 + $0x38] sm:$0xff]  }
 0x144   :  { %v235_v42 = vmax.f32 %v234_v41, 0.0  ;;  %v862_v41 = vld [vmem:[#allocation10 + $0x30] sm:$0xff]  }
 0x146   :  { %v236_v43 = vadd.f32 1e-05, %v235_v42  ;;  %v863_v42 = vld [vmem:[#allocation10 + $0x28] sm:$0xff]  }
 0x148   :  { %869 = vrsqrt.f32 %v236_v43  ;;  %v864_v43 = vld [vmem:[#allocation10 + $0x20] sm:$0xff]  }
 0x155   :  { %v870_v48 = vpop.eup %869 }
 0x156   :  { %v238_v49 = vmul.f32 %v870_v48, %v215_v46  ;;  %v867_v46 = vld [vmem:[#allocation10 + $0x8] sm:$0xff]   ;;  %v868_v48 = vld [vmem:[#allocation10] sm:$0xff]  }
 0x158   :  { %v239_v51 = vmul.f32 %v238_v49, %v224_v38  ;;  %v244_v52 = vrot.slane %v238_v49, %v1127_v47  ;;  %v690_v49 = vld [vmem:[#allocation11 + $0x6] ss:$0 sm:$0xff] }
 0x15a   :  { %v240_v53 = vsub.f32 %v216_v50, %v239_v51  ;;  %v245_v54 = vmul.f32 %v244_v52, %v217_v22 }
 0x15c   :  { %v249_v55 = vrot.slane %v240_v53, %v1127_v47 }
 0x15e   :  { %v250_v56 = vadd.f32 %v249_v55, %v245_v54 }
 0x160   :  { %v251_v57 = vpack.c.bf16 %v250_v56, %v250_v56 }
 0x162   :  { %781 = vmatmul.mubr.bf16.vlgmr.msra.gmra.mxu1 %v251_v57 }
 0x163   :  { %820 = vmatprep.mubr.msk.bf16.mxu1 %vm1036_vm0, %v1035_v0  ;;  %805 = vmatpush3.bf16.msra.mxu1 %v861_v40 }
 0x164   :  { %806 = vmatprep.subr.bf16.mxu1 %v1035_v0 }
 0x167   :  { %807 = vmatpush3.bf16.msra.mxu1 %v862_v41 }
 0x168   :  { %808 = vmatprep.subr.bf16.mxu1 %v1035_v0 }
 0x16b   :  { %809 = vmatpush3.bf16.msra.mxu1 %v863_v42 }
 0x16c   :  { %810 = vmatprep.subr.bf16.mxu1 %v1035_v0 }
 0x16f   :  { %811 = vmatpush3.bf16.msra.mxu1 %v864_v43 }
 0x170   :  { %812 = vmatprep.subr.bf16.mxu1 %v1035_v0 }
 0x173   :  { %813 = vmatpush3.bf16.msra.mxu1 %v865_v44 }
 0x174   :  { %814 = vmatprep.subr.bf16.mxu1 %v1035_v0 }
 0x177   :  { %815 = vmatpush3.bf16.msra.mxu1 %v866_v45 }
 0x178   :  { %816 = vmatprep.subr.bf16.mxu1 %v1035_v0 }
 0x17b   :  { %817 = vmatpush3.bf16.msra.mxu1 %v867_v46 }
 0x17c   :  { %818 = vmatprep.subr.bf16.mxu1 %v1035_v0 }
 0x17f   :  { %819 = vmatpush3.bf16.msra.mxu1 %v868_v48 }
 0x222   :  { %v355_v4 = vpop.f32.mrf.mxu1 }
 0x223   :  { %v356_v5 = vadd.f32 %v681_v3, %v355_v4 }
 0x224   :  { %v782_v6 = vpop.f32.mrf.mxu1 }
 0x225   :  { %v363_v7 = vmax.f32 %v356_v5, 0.0 }
 0x226   :  { %v358_v8 = vpop.f32.mrf.mxu1 }
 0x227   :  { %v364_v9 = vrot.slane %v363_v7, 4  ;;  %v371_v10 = vmul.f32 %v363_v7, %v363_v7 }
 0x228   :  { %v783_v11 = vpop.f32.mrf.mxu1 }
 0x229   :  { %v365_v12 = vadd.f32 %v364_v9, %v363_v7  ;;  %v372_v13 = vrot.slane %v371_v10, 4  ;;  %v507_v11 = vld [vmem:[#allocation11 + $0x7] sm:$0x1] }
 0x22b   :  { %v366_v14 = vrot.slane %v365_v12, 2  ;;  %v373_v15 = vadd.f32 %v372_v13, %v371_v10 }
 0x22d   :  { %v367_v16 = vadd.f32 %v366_v14, %v365_v12  ;;  %v374_v17 = vrot.slane %v373_v15, 2  ;;  %v508_v14 = vld [vmem:[#allocation11 + $0x8] sm:$0x1] }
 0x22f   :  { %v368_v18 = vrot.slane %v367_v16, 1  ;;  %v375_v19 = vadd.f32 %v374_v17, %v373_v15 }
 0x231   :  { %v369_v20 = vadd.f32 %v368_v18, %v367_v16  ;;  %v376_v21 = vrot.slane %v375_v19, 1 }
 0x233   :  { %v370_v22 = vmul.f32 0.125, %v369_v20  ;;  %v377_v23 = vadd.f32 %v376_v21, %v375_v19 }
 0x235   :  { %v378_v24 = vmul.f32 0.125, %v377_v23  ;;  %v379_v25 = vmul.f32 %v370_v22, %v370_v22 }
 0x237   :  { %v380_v26 = vsub.f32 %v378_v24, %v379_v25 }
 0x239   :  { %v381_v27 = vmax.f32 %v380_v26, 0.0 }
 0x23b   :  { %v382_v28 = vadd.f32 1e-05, %v381_v27 }
 0x23d   :  { %871 = vrsqrt.f32 %v382_v28 }
 0x24a   :  { %v872_v30 = vpop.eup %871 }
 0x24b   :  { %v384_v31 = vmul.f32 %v872_v30, %v361_v29 }
 0x24d   :  { %v390_v33 = vrot.slane %v384_v31, %v1127_v47  ;;  %v385_v34 = vmul.f32 %v384_v31, %v370_v22  ;;  %v699_v22 = vld [vmem:[#allocation11 + $0x9] ss:$0 sm:$0xff] }
 0x24f   :  { %v386_v35 = vsub.f32 %v362_v32, %v385_v34  ;;  %v391_v36 = vmul.f32 %v390_v33, %v363_v7 }
 0x251   :  { %v395_v37 = vrot.slane %v386_v35, %v1127_v47 }
 0x253   :  { %v396_v38 = vadd.f32 %v395_v37, %v391_v36 }
 0x255   :  { %v397_v39 = vpack.c.bf16 %v396_v38, %v396_v38 }
 0x257   :  { %801 = vmatmul.mubr.bf16.vlgmr.msra.gmra.mxu0 %v397_v39 }
 0x317   :  { %v501_v50 = vpop.f32.mrf.mxu0 }
 0x318   :  { %v502_v51 = vadd.f32 %v690_v49, %v501_v50 }
 0x319   :  { %v802_v52 = vpop.f32.mrf.mxu0 }
 0x31a   :  { %v509_v53 = vmax.f32 %v502_v51, 0.0 }
 0x31b   :  { %v504_v54 = vpop.f32.mrf.mxu0 }
 0x31c   :  { %v510_v55 = vrot.slane %v509_v53, 4  ;;  %v517_v56 = vmul.f32 %v509_v53, %v509_v53 }
 0x31d   :  { %v803_v57 = vpop.f32.mrf.mxu0 }
 0x31e   :  { %v511_v58 = vadd.f32 %v510_v55, %v509_v53  ;;  %v518_v59 = vrot.slane %v517_v56, 4 }
 0x320   :  { %v512_v60 = vrot.slane %v511_v58, 2  ;;  %v519_v61 = vadd.f32 %v518_v59, %v517_v56 }
 0x322   :  { %v513_v62 = vadd.f32 %v512_v60, %v511_v58  ;;  %v520_v63 = vrot.slane %v519_v61, 2 }
 0x324   :  { %v514_v1 = vrot.slane %v513_v62, 1  ;;  %v521_v2 = vadd.f32 %v520_v63, %v519_v61 }
 0x326   :  { %v515_v3 = vadd.f32 %v514_v1, %v513_v62  ;;  %v522_v0 = vrot.slane %v521_v2, 1 }
 0x328   :  { %v516_v4 = vmul.f32 0.125, %v515_v3  ;;  %v523_v5 = vadd.f32 %v522_v0, %v521_v2 }
 0x32a   :  { %v524_v6 = vmul.f32 0.125, %v523_v5  ;;  %v525_v7 = vmul.f32 %v516_v4, %v516_v4 }
 0x32c   :  { %v526_v8 = vsub.f32 %v524_v6, %v525_v7 }
 0x32e   :  { %v527_v9 = vmax.f32 %v526_v8, 0.0 }
 0x330   :  { %v528_v10 = vadd.f32 1e-05, %v527_v9 }
 0x332   :  { %873 = vrsqrt.f32 %v528_v10 }
 0x33f   :  { %v874_v12 = vpop.eup %873 }
 0x340   :  { %v530_v13 = vmul.f32 %v874_v12, %v507_v11 }
 0x342   :  { %v536_v15 = vrot.slane %v530_v13, %v1127_v47  ;;  %v531_v16 = vmul.f32 %v530_v13, %v516_v4 }
 0x344   :  { %v532_v17 = vsub.f32 %v508_v14, %v531_v16  ;;  %v537_v18 = vmul.f32 %v536_v15, %v509_v53 }
 0x346   :  { %v541_v19 = vrot.slane %v532_v17, %v1127_v47 }
 0x348   :  { %v542_v20 = vadd.f32 %v541_v19, %v537_v18 }
 0x34a   :  { %v543_v21 = vpack.c.bf16 %v542_v20, %v542_v20 }
 0x34c   :  { %821 = vmatmul.mubr.bf16.vlgmr.msra.gmra.mxu1 %v543_v21 }
 0x40c   :  { %v647_v23 = vpop.f32.mrf.mxu1 }
 0x40d   :  { %v648_v24 = vadd.f32 %v699_v22, %v647_v23 }
 0x40e   :  { %v822_v25 = vpop.f32.mrf.mxu1 }
 0x40f   :  { %653 = vst [vmem:[#allocation13] sm:$0xff] %v648_v24 }
 0x410   :  { %v650_v26 = vpop.f32.mrf.mxu1 }
 0x411   :  { %1006 = shalt.err (!%p1003_p6)
}
 0x412   :  { %663 = dma.vmem_to_hbm [thread:$0]  %s661_s5, 128, %s1160_s6, [#allocation4]   ;;  %v823_v47 = vpop.f32.mrf.mxu1 }
 0x413   :  { %1023 = dma.done.wait [#allocation4], 128  }
 0x414   :  { %1024 = vsyncadd [#allocation4], 4294967168 }
 0x415   :  { %667 = vsyncpa [#allocation3], 1 }
 0x416   :  { %668 = vsyncpa [#allocation6], 1 }
 0x417   :  { %669 = vsyncpa [#allocation9], 1 }
 0x418   :  { %670 = vsyncpa [#allocation12], 1 }
 0x419   :  { %671 = vsyncpa [#allocation4], 1 }

</bundles_post_ra>
